<compile_context>
chip_gen: v7x
topology: tpu7x:2x2x1
jax: 0.10.0
libtpu: 0.0.40
codegen_flags: <defaults>
</compile_context>

<pallas_src>
import jax
import jax.numpy as jnp
from jax.experimental import pallas as pl
from jax.experimental.pallas import tpu as pltpu


_VMEM_BLOCK_BUDGET = 24 * 1024 * 1024   # working-set target; fits v7x's 64 MiB VMEM
_VMEM_LIMIT_BYTES = 48 * 1024 * 1024    # scoped limit used only when the budget needs it


# --------------------------------------------------------------------------- #
# Kernels
# --------------------------------------------------------------------------- #
def _finalize_softmax(out_ref):
    """Softmax over the sequence (sublane) axis of the resident (S, TB) score block."""
    s = out_ref[...]                                   # (S, TB) raw scores, f32
    m = jnp.max(s, axis=0, keepdims=True)              # (1, TB)
    e = jnp.exp(s - m)
    d = jnp.sum(e, axis=0, keepdims=True)
    r = pl.reciprocal(d, approx=True)                  # EUP slot
    r = r * (2.0 - d * r)                              # one Newton step -> near-exact
    out_ref[...] = e * r


def _store_scores_and_maybe_finalize(out_ref, scores, ts):
    """Write this S-tile's raw scores into the resident block; softmax on the last tile."""
    j = pl.program_id(1)
    row0 = pl.multiple_of(j * ts, ts)
    out_ref[pl.ds(row0, ts), :] = scores

    @pl.when(j == pl.num_programs(1) - 1)
    def _():
        _finalize_softmax(out_ref)


def _attn_dot_kernel(h_ref, enc_ref, out_ref):
    ts = enc_ref.shape[0]
    q = h_ref[...].astype(jnp.float32)                 # (TB, H)
    e = enc_ref[...].astype(jnp.float32)               # (TS, TB, H)
    scores = jnp.sum(q[None, :, :] * e, axis=-1)       # (TS, TB): VPU mul + lane reduce
    _store_scores_and_maybe_finalize(out_ref, scores, ts)


def _attn_general_kernel(h_ref, enc_ref, wa_ref, out_ref):
    ts = enc_ref.shape[0]
    # Associativity rewrite: sum_o h[b,o] * (enc @ Wa^T)[s,b,o] == enc[s,b,:] . (h[b,:] @ Wa)
    # (Wa is kept in PyTorch (out, in) layout so no in-kernel transpose is needed; the
    #  Linear bias adds a per-batch constant along S, which cancels in the softmax.)
    q = jnp.dot(h_ref[...], wa_ref[...], preferred_element_type=jnp.float32)   # (TB, H)
    e = enc_ref[...].astype(jnp.float32)
    scores = jnp.sum(q[None, :, :] * e, axis=-1)        # (TS, TB)
    _store_scores_and_maybe_finalize(out_ref, scores, ts)


def _attn_concat_kernel(h_ref, enc_ref, wch_ref, wce_ref, bc_ref, v_ref, out_ref):
    ts, tb, hd = enc_ref.shape
    # cat((hidden.expand, enc), 2) @ W.T == hidden @ W_h + enc @ W_e with the (2H, H)
    # weight pre-split -> no lane-axis concatenate inside the kernel.
    hid_part = jnp.dot(h_ref[...], wch_ref[...],
                       preferred_element_type=jnp.float32)                 # (TB, H)
    # (free relabel when TB % 8 == 0; otherwise a small in-tile relayout copy)
    enc_part = jnp.dot(enc_ref[...].reshape(ts * tb, hd), wce_ref[...],
                       preferred_element_type=jnp.float32).reshape(ts, tb, hd)
    energy = jnp.tanh(enc_part + hid_part[None, :, :]
                      + bc_ref[...].astype(jnp.float32))                   # (TS, TB, H)
    # v-score as VPU multiply + lane reduce (avoids the M=1 MXU GEMV entirely).
    scores = jnp.sum(v_ref[...].astype(jnp.float32) * energy, axis=-1)     # (TS, TB)
    _store_scores_and_maybe_finalize(out_ref, scores, ts)


# --------------------------------------------------------------------------- #
# Tile selection (biggest tiles that satisfy layout rules and the VMEM budget)
# --------------------------------------------------------------------------- #
def _pick_tiles(S, B, H, itemsize):
    def divisors_desc(n):
        return [d for d in range(n, 0, -1) if n % d == 0]

    # TB is the lane axis of the (S, TB) score block and the sublane axis of the
    # (TS, TB, H) encoder block -> it must be the full B or a 128-multiple divisor.
    tb_opts = [B] + [d for d in divisors_desc(B) if d % 128 == 0 and d != B]
    ts_opts = divisors_desc(S)

    for tb in tb_opts:
        for ts in ts_opts:
            enc_bytes = 2 * ts * tb * H * itemsize        # double-buffered encoder tile
            out_bytes = 2 * S * tb * 4                    # resident f32 score block
            misc_bytes = 2 * tb * H * itemsize + 2 * (2 * H * H + 3 * H) * 4
            total = enc_bytes + out_bytes + misc_bytes
            if total <= _VMEM_BLOCK_BUDGET:
                return tb, ts, total
    tb, ts = tb_opts[-1], 1
    return tb, ts, 2 * ts * tb * H * itemsize + 2 * S * tb * 4


# --------------------------------------------------------------------------- #
# Wrapper
# --------------------------------------------------------------------------- #
def attn_forward(method, hidden, encoder_outputs, params=None):
    """Pallas port of Attn.forward.  hidden (1,B,H); encoder_outputs (S,B,H) -> (B,1,S)."""
    if method not in ("dot", "general", "concat"):
        raise ValueError(f"{method} is not an appropriate attention method.")
    S, B, H = encoder_outputs.shape

    # (1, B, H) -> (B, H): pure metadata reshape, no data movement.  The big encoder
    # tensor is consumed in its native (S, B, H) layout (no wrapper-side transpose).
    h2 = hidden.reshape(B, H)

    TB, TS, est_bytes = _pick_tiles(S, B, H, encoder_outputs.dtype.itemsize)
    grid = (B // TB, S // TS)

    h_spec = pl.BlockSpec((TB, H), lambda i, j: (i, 0))
    enc_spec = pl.BlockSpec((TS, TB, H), lambda i, j: (j, i, 0))
    out_spec = pl.BlockSpec((S, TB), lambda i, j: (0, i))   # resident across the S axis

    def const_spec(shape):
        nd = len(shape)
        return pl.BlockSpec(shape, lambda i, j, _nd=nd: (0,) * _nd)

    if method == "dot":
        kernel, extra = _attn_dot_kernel, ()
    elif method == "general":
        kernel, extra = _attn_general_kernel, (params["wa"],)
    else:  # concat
        kernel = _attn_concat_kernel
        extra = (params["wc_h"], params["wc_e"], params["bc"], params["v"])
    extra_specs = tuple(const_spec(p.shape) for p in extra)

    # Raise the scoped-VMEM limit only when the working set needs it (v5e scoped
    # default is 16 MiB; we never ask above 48 MiB, which fits v7x's 64 MiB physical).
    cp_kwargs = dict(dimension_semantics=("parallel", "arbitrary"))
    if est_bytes > 16 * 1024 * 1024:
        cp_kwargs["vmem_limit_bytes"] = _VMEM_LIMIT_BYTES

    weights_sb = pl.pallas_call(
        kernel,
        out_shape=jax.ShapeDtypeStruct((S, B), jnp.float32),
        grid=grid,
        in_specs=[h_spec, enc_spec, *extra_specs],
        out_specs=out_spec,
        compiler_params=pltpu.CompilerParams(**cp_kwargs),
    )(h2, encoder_outputs, *extra)

    # Only the tiny (S, B) score matrix is relaid out in XLA (negligible HBM traffic).
    return jnp.transpose(weights_sb)[:, None, :]            # (B, 1, S)


# --------------------------------------------------------------------------- #
# Pure-JAX reference (mirrors the PyTorch module) + parameters
# --------------------------------------------------------------------------- #
def attn_reference(method, hidden, encoder_outputs, params=None):
    if method == "dot":
        energies = jnp.sum(hidden * encoder_outputs, axis=2)                    # (S, B)
    elif method == "general":
        energy = encoder_outputs @ params["wa"].T + params["ba"]                # (S, B, H)
        energies = jnp.sum(hidden * energy, axis=2)
    else:  # concat
        energy = jnp.tanh(hidden @ params["wc_h"] + encoder_outputs @ params["wc_e"]
                          + params["bc"])                                       # (S, B, H)
        energies = jnp.sum(params["v"] * energy, axis=2)
    return jax.nn.softmax(energies.T, axis=1)[:, None, :]                       # (B, 1, S)


def init_params(key, hidden_size):
    H = hidden_size
    ks = jax.random.split(key, 6)
    u = lambda k, shape, b: jax.random.uniform(k, shape, jnp.float32, -b, b)
    b1 = 1.0 / float(H) ** 0.5
    b2 = 1.0 / float(2 * H) ** 0.5
    return {
        # 'general': nn.Linear(H, H) weight kept in PyTorch (out, in) layout so the
        # kernel's associativity rewrite (q = h @ Wa) needs no transpose.
        "wa": u(ks[0], (H, H), b1),
        "ba": u(ks[1], (1, H), b1),
        # 'concat': nn.Linear(2H, H) weight stored transposed and pre-split into the
        # hidden-half / encoder-half so the kernel needs no lane concatenate.
        "wc_h": u(ks[2], (H, H), b2),
        "wc_e": u(ks[3], (H, H), b2),
        "bc": u(ks[4], (1, H), b2),
        # 'concat': v parameter, kept (1, 1, H) for a trivially explicit broadcast.
        "v": jax.random.normal(ks[5], (1, 1, H), jnp.float32),
    }


if __name__ == "__main__":
    S, B, H = 8, 2, 32
    key = jax.random.PRNGKey(0)
    k_h, k_e, k_p = jax.random.split(key, 3)

    hidden = jax.random.normal(k_h, (1, B, H), jnp.float32)           # (1, B, H)
    encoder_outputs = jax.random.normal(k_e, (S, B, H), jnp.float32)  # (S, B, H)
    params = init_params(k_p, H)

    for method in ("dot", "general", "concat"):
        out = jax.block_until_ready(attn_forward(method, hidden, encoder_outputs, params))
        ref = attn_reference(method, hidden, encoder_outputs, params)
        assert out.shape == (B, 1, S), (method, out.shape)
        assert jnp.allclose(out, ref, atol=1e-4, rtol=1e-4), (
            method, float(jnp.max(jnp.abs(out - ref))))
        assert jnp.allclose(jnp.sum(out, axis=-1), 1.0, atol=1e-4), method

    print("KERNEL_OK")
</pallas_src>

<mosaic_0001>
module attributes {stable_mosaic.version = 11 : i64} {
  func.func @_attn_dot_kernel(%arg0: i32, %arg1: i32, %arg2: memref<2x32xf32, #tpu.memory_space<vmem>>, %arg3: memref<8x2x32xf32, #tpu.memory_space<vmem>>, %arg4: memref<8x2xf32, #tpu.memory_space<vmem>>) attributes {dimension_semantics = [#tpu.dimension_semantics<parallel>, #tpu.dimension_semantics<arbitrary>], iteration_bounds = array<i64: 1, 1>, scalar_prefetch = 0 : i64, scratch_operands = 0 : i64, tpu.core_type = #tpu.core_type<tc>, window_params = [{transform_indices = @transform_0, window_bounds = array<i64: 2, 32>}, {transform_indices = @transform_1, window_bounds = array<i64: 8, 2, 32>}, {transform_indices = @transform_2, window_bounds = array<i64: 8, 2>}]} {
    %c0 = arith.constant 0 : index
    %c0_0 = arith.constant 0 : index
    %0 = vector.load %arg2[%c0, %c0_0] : memref<2x32xf32, #tpu.memory_space<vmem>>, vector<2x32xf32>
    %c0_1 = arith.constant 0 : index
    %c0_2 = arith.constant 0 : index
    %c0_3 = arith.constant 0 : index
    %1 = vector.load %arg3[%c0_1, %c0_2, %c0_3] : memref<8x2x32xf32, #tpu.memory_space<vmem>>, vector<8x2x32xf32>
    %2 = vector.shape_cast %0 : vector<2x32xf32> to vector<1x2x32xf32>
    %3 = vector.broadcast %2 : vector<1x2x32xf32> to vector<8x2x32xf32>
    %4 = arith.mulf %3, %1 : vector<8x2x32xf32>
    %cst = arith.constant dense<0.000000e+00> : vector<8x2xf32>
    %5 = vector.multi_reduction <add>, %4, %cst [2] : vector<8x2x32xf32> to vector<8x2xf32>
    %c8_i32 = arith.constant 8 : i32
    %6 = arith.muli %arg1, %c8_i32 : i32
    %7 = tpu.assume_multiple %6, 8 : i32
    %8 = arith.index_cast %7 : i32 to index
    %c0_4 = arith.constant 0 : index
    %9 = vector.load %arg4[%8, %c0_4] : memref<8x2xf32, #tpu.memory_space<vmem>>, vector<8x2xf32>
    tpu.vector_store %arg4[%8, %c0_4], %5 {strides = array<i32>} : memref<8x2xf32, #tpu.memory_space<vmem>>, vector<8x2xf32>,
    %c0_i32 = arith.constant 0 : i32
    %10 = arith.cmpi eq, %arg1, %c0_i32 : i32
    %11 = arith.extui %10 : i1 to i32
    %c0_i32_5 = arith.constant 0 : i32
    %12 = arith.cmpi ne, %11, %c0_i32_5 : i32
    scf.if %12 {
      %c0_6 = arith.constant 0 : index
      %c0_7 = arith.constant 0 : index
      %13 = vector.load %arg4[%c0_6, %c0_7] : memref<8x2xf32, #tpu.memory_space<vmem>>, vector<8x2xf32>
      %cst_8 = arith.constant dense<0xFF800000> : vector<2xf32>
      %14 = vector.multi_reduction <maximumf>, %13, %cst_8 [0] : vector<8x2xf32> to vector<2xf32>
      %15 = vector.shape_cast %14 : vector<2xf32> to vector<1x2xf32>
      %16 = vector.broadcast %15 : vector<1x2xf32> to vector<8x2xf32>
      %17 = arith.subf %13, %16 : vector<8x2xf32>
      %18 = math.exp %17 : vector<8x2xf32>
      %cst_9 = arith.constant dense<0.000000e+00> : vector<2xf32>
      %19 = vector.multi_reduction <add>, %18, %cst_9 [0] : vector<8x2xf32> to vector<2xf32>
      %20 = vector.shape_cast %19 : vector<2xf32> to vector<1x2xf32>
      %21 = tpu.reciprocal %20 {approx = true} : vector<1x2xf32> -> vector<1x2xf32>
      %22 = arith.mulf %20, %21 : vector<1x2xf32>
      %cst_10 = arith.constant 2.000000e+00 : f32
      %23 = vector.broadcast %cst_10 : f32 to vector<1x2xf32>
      %24 = arith.subf %23, %22 : vector<1x2xf32>
      %25 = arith.mulf %21, %24 : vector<1x2xf32>
      %26 = vector.broadcast %25 : vector<1x2xf32> to vector<8x2xf32>
      %27 = arith.mulf %18, %26 : vector<8x2xf32>
      %c0_11 = arith.constant 0 : index
      %c0_12 = arith.constant 0 : index
      %28 = vector.load %arg4[%c0_11, %c0_12] : memref<8x2xf32, #tpu.memory_space<vmem>>, vector<8x2xf32>
      tpu.vector_store %arg4[%c0_11, %c0_12], %27 {strides = array<i32>} : memref<8x2xf32, #tpu.memory_space<vmem>>, vector<8x2xf32>,
    } else {
    }
    return
  }
  func.func @transform_0(%arg0: i32, %arg1: i32) -> (i32, i32) {
    %c0_i32 = arith.constant 0 : i32
    %c0_i32_0 = arith.constant 0 : i32
    return %arg0, %c0_i32 : i32, i32
  }
  func.func @transform_1(%arg0: i32, %arg1: i32) -> (i32, i32, i32) {
    %c0_i32 = arith.constant 0 : i32
    %c0_i32_0 = arith.constant 0 : i32
    return %arg1, %arg0, %c0_i32 : i32, i32, i32
  }
  func.func @transform_2(%arg0: i32, %arg1: i32) -> (i32, i32) {
    %c0_i32 = arith.constant 0 : i32
    %c0_i32_0 = arith.constant 0 : i32
    return %c0_i32, %arg0 : i32, i32
  }
}

</mosaic_0001>

<bundles_post_ra>
// kernel: tpu_custom_call.1
= control target key start
LH: loop header
LB: loop body
LE: loop exit
PB: predicated region body
PF: predicated region fallthrough
CT: control target
= control target key end

     0   :  { %7 = vsyncpa [#allocation3], 0  ;;  %s301_s0 = inlined_call_operand.hbm [shape: f32[2,32], index: 0, kind: input, shape index: {}]   ;;  %s302_s1 = inlined_call_operand.hbm [shape: f32[8,2,32], index: 1, kind: input, shape index: {}]   ;;  %s303_s2 = inlined_call_operand.vmem [shape: f32[8,2], index: 2, kind: output, shape index: {}]  }
   0x1   :  { %8 = vsyncpa [#allocation5], 0  ;;  %s230_s9 = smov [#allocation2]   ;;  %s231_s11 = smov [#allocation4]  }
   0x2   :  { %s15_s10 = sshll.u32 %s230_s9, 4  ;;  %s24_s12 = sshll.u32 %s231_s11, 4  ;;  %s16_s10 = int_to_ptr.vmem [resolvable:$true] %s15_s10  ;;  %s249_s12 = int_to_ptr.vmem [resolvable:$true] %s24_s12 }
   0x3   :  { %s182_s15 = scalar_lea.hbm %s301_s0, 32 }
   0x4   :  { %p183_p0 = scmp.ne.s32.totalorder %s301_s0, %s182_s15  ;;  %p186_p1 = scmp.lt.u32.totalorder %s182_s15, %s301_s0 }
   0x6   :  { %p188_p2 = pnand %p186_p1, %p183_p0 }
   0x8   :  { %191 = shalt.err (!%p188_p2)
}
   0x9   :  { %s192_s20 = scalar_lea.vmem %s16_s10, 32  ;;  %p197_p4 = scmp.lt.s32.totalorder %s16_s10, %s16_s10 }
   0xa   :  { %p193_p3 = scmp.ne.s32.totalorder %s16_s10, %s192_s20  ;;  %p198_p5 = scmp.lt.s32.totalorder %s192_s20, %s192_s20 }
   0xc   :  { %p199_p6 = por %p198_p5, %p197_p4 }
   0xe   :  { %p200_p7 = pnand %p199_p6, %p193_p3 }
  0x10   :  { %203 = shalt.err (!%p200_p7)
}
  0x11   :  { %18 = dma.hbm_to_vmem [thread:$0]  %s301_s0, 32, %s16_s10, [#allocation3]  }
  0x12   :  { %s204_s25 = scalar_lea.hbm %s302_s1, 256 }
  0x13   :  { %p205_p8 = scmp.ne.s32.totalorder %s302_s1, %s204_s25  ;;  %p208_p9 = scmp.lt.u32.totalorder %s204_s25, %s302_s1 }
  0x15   :  { %p210_p10 = pnand %p208_p9, %p205_p8 }
  0x17   :  { %213 = shalt.err (!%p210_p10)
}
  0x18   :  { %s214_s30 = scalar_lea.vmem %s249_s12, 256  ;;  %p219_p12 = scmp.lt.s32.totalorder %s249_s12, %s249_s12 }
  0x19   :  { %p215_p11 = scmp.ne.s32.totalorder %s249_s12, %s214_s30  ;;  %p220_p13 = scmp.lt.s32.totalorder %s214_s30, %s214_s30 }
  0x1b   :  { %p221_p0 = por %p220_p13, %p219_p12 }
  0x1d   :  { %p222_p1 = pnand %p221_p0, %p215_p11 }
  0x1f   :  { %225 = shalt.err (!%p222_p1)
}
  0x20   :  { %s232_s0 = smov 32   ;;  %s233_s3 = smov 2  }
  0x21   :  { %30 = dma.hbm_to_vmem [thread:$0]  %s302_s1, 256, %s249_s12, [#allocation5], %s232_s0, %s232_s0, %s233_s3  }
  0x22   :  { %226 = dma.done.wait [#allocation3], 32  }
  0x23   :  { %227 = vsyncadd [#allocation3], 4294967264 }
  0x24   :  { %228 = dma.done.wait [#allocation5], 256  }
  0x25   :  { %229 = vsyncadd [#allocation5], 4294967040  ;;  %vm54_vm0 = vcmask 254976   ;;  %v37_v0 = vld [vmem:[#allocation2] sm:$0x3]  ;;  %v88_v25 = vlaneseq  ;;  %vm122_vm1 = vcmask 1041409  }
  0x26   :  { %v38_v1 = vld [vmem:[#allocation4] sm:$0x3]  ;;  %v40_v2 = vld [vmem:[#allocation4 + $0x4] sm:$0x3]  ;;  %v39_v5 = vld [vmem:[#allocation4 + $0x2] sm:$0x3] }
  0x27   :  { %v46_v3 = vmul.f32 %v38_v1, %v37_v0  ;;  %v48_v4 = vmul.f32 %v40_v2, %v37_v0  ;;  %v41_v6 = vld [vmem:[#allocation4 + $0x6] sm:$0x3]  ;;  %v47_v7 = vmul.f32 %v39_v5, %v37_v0  ;;  %v42_v9 = vld [vmem:[#allocation4 + $0x8] sm:$0x3]  ;;  %v43_v10 = vld [vmem:[#allocation4 + $0xa] sm:$0x3] }
  0x28   :  { %v49_v8 = vmul.f32 %v41_v6, %v37_v0  ;;  %v50_v15 = vmul.f32 %v42_v9, %v37_v0  ;;  %v51_v16 = vmul.f32 %v43_v10, %v37_v0  ;;  %v44_v17 = vld [vmem:[#allocation4 + $0xc] sm:$0x3]  ;;  %v45_v18 = vld [vmem:[#allocation4 + $0xe] sm:$0x3]  ;;  %v89_v26 = vand.u32 127, %v88_v25 }
  0x29   :  { %v55_v11 = vsel %vm54_vm0, %v46_v3, 0.0  ;;  %v61_v12 = vsel %vm54_vm0, %v48_v4, 0.0  ;;  %v58_v13 = vsel %vm54_vm0, %v47_v7, 0.0  ;;  %v52_v21 = vmul.f32 %v44_v17, %v37_v0 }
  0x2a   :  { %56 = vadd.xlane.f32.xlu0 %v55_v11  ;;  %62 = vadd.xlane.f32.xlu1 %v61_v12  ;;  %v64_v14 = vsel %vm54_vm0, %v49_v8, 0.0  ;;  %v67_v19 = vsel %vm54_vm0, %v50_v15, 0.0  ;;  %v70_v20 = vsel %vm54_vm0, %v51_v16, 0.0  ;;  %v53_v22 = vmul.f32 %v45_v18, %v37_v0 }
  0x2b   :  { %v73_v23 = vsel %vm54_vm0, %v52_v21, 0.0  ;;  %v91_v27 = vshrl.u32 %v88_v25, 7  ;;  %vm124_vm2 = vcmask 1042434   ;;  %vm126_vm3 = vcmask 1043459  }
  0x2c   :  { %v76_v24 = vsel %vm54_vm0, %v53_v22, 0.0  ;;  %vm128_vm4 = vcmask 1044484   ;;  %vm130_vm5 = vcmask 1045509   ;;  %vm132_vm6 = vcmask 1046534  }
  0x2d   :  { %v92_v30 = vsub.s32 %v89_v26, %v91_v27  ;;  %vm134_vm7 = vcmask 1047559   ;;  %vm138_vm8 = vcmask 15360  }
  0x2e   :  { %59 = vadd.xlane.f32.xlu0 %v58_v13  ;;  %65 = vadd.xlane.f32.xlu1 %v64_v14 }
  0x32   :  { %68 = vadd.xlane.f32.xlu0 %v67_v19  ;;  %71 = vadd.xlane.f32.xlu1 %v70_v20 }
  0x36   :  { %74 = vadd.xlane.f32.xlu0 %v73_v23  ;;  %77 = vadd.xlane.f32.xlu1 %v76_v24 }
  0xb7   :  { %v57_v28 = vpop.xlane.xlu0 %56  ;;  %v63_v29 = vpop.xlane.xlu1 %62 }
  0xb8   :  { %v93_v33 = vrot.slane %v57_v28, %v92_v30  ;;  %v101_v36 = vrot.slane %v63_v29, %v92_v30 }
  0xbb   :  { %v60_v31 = vpop.xlane.xlu0 %59  ;;  %v66_v32 = vpop.xlane.xlu1 %65 }
  0xbc   :  { %v97_v34 = vrot.slane %v60_v31, %v92_v30  ;;  %v105_v35 = vrot.slane %v66_v32, %v92_v30 }
  0xbe   :  { %v123_v37 = vsel %vm122_vm1, %v97_v34, %v93_v33 }
  0xbf   :  { %v125_v38 = vsel %vm124_vm2, %v101_v36, %v123_v37  ;;  %v69_v39 = vpop.xlane.xlu0 %68  ;;  %v72_v40 = vpop.xlane.xlu1 %71 }
  0xc0   :  { %v127_v41 = vsel %vm126_vm3, %v105_v35, %v125_v38  ;;  %v109_v42 = vrot.slane %v69_v39, %v92_v30  ;;  %v113_v43 = vrot.slane %v72_v40, %v92_v30 }
  0xc2   :  { %v129_v44 = vsel %vm128_vm4, %v109_v42, %v127_v41 }
  0xc3   :  { %v75_v45 = vpop.xlane.xlu0 %74  ;;  %v78_v46 = vpop.xlane.xlu1 %77  ;;  %v131_v49 = vsel %vm130_vm5, %v113_v43, %v129_v44 }
  0xc4   :  { %v117_v47 = vrot.slane %v75_v45, %v92_v30  ;;  %v121_v48 = vrot.slane %v78_v46, %v92_v30 }
  0xc6   :  { %v133_v50 = vsel %vm132_vm6, %v117_v47, %v131_v49 }
  0xc7   :  { %v135_v51 = vsel %vm134_vm7, %v121_v48, %v133_v50 }
  0xc8   :  { %139 = vst.msk [vmem:[%s303_s2] sm:$0xff] %vm138_vm8, %v135_v51 }
  0xcf   :  { %v144_v52 = vld [vmem:[%s303_s2] sm:$0xff] }
  0xd0   :  { %v145_v53 = vsel %vm138_vm8, %v144_v52, -inf }
  0xd1   :  { %v146_v54 = vrot.slane %v145_v53, 4 }
  0xd3   :  { %v147_v55 = vmax.f32 %v145_v53, %v146_v54 }
  0xd5   :  { %v148_v56 = vrot.slane %v147_v55, 2 }
  0xd7   :  { %v149_v57 = vmax.f32 %v147_v55, %v148_v56 }
  0xd9   :  { %v150_v58 = vrot.slane %v149_v57, 1 }
  0xdb   :  { %v151_v59 = vmax.f32 %v149_v57, %v150_v58 }
  0xdd   :  { %v152_v60 = vsub.f32 %v144_v52, %v151_v59 }
  0xdf   :  { %v153_v61 = vmul.f32 1.442695, %v152_v60 }
  0xe1   :  { %178 = vpow2.f32 %v153_v61 }
  0xeb   :  { %v179_v62 = vpop.eup %178 }
  0xec   :  { %v155_v63 = vsel %vm138_vm8, %v179_v62, 0.0 }
  0xed   :  { %v156_v0 = vrot.slane %v155_v63, 4 }
  0xef   :  { %v157_v1 = vadd.f32 %v156_v0, %v155_v63 }
  0xf1   :  { %v158_v2 = vrot.slane %v157_v1, 2 }
  0xf3   :  { %v159_v3 = vadd.f32 %v158_v2, %v157_v1 }
  0xf5   :  { %v160_v4 = vrot.slane %v159_v3, 1 }
  0xf7   :  { %v161_v5 = vadd.f32 %v160_v4, %v159_v3 }
  0xf9   :  { %180 = vrcp.f32 %v161_v5 }
 0x103   :  { %v181_v6 = vpop.eup %180 }
 0x104   :  { %v163_v7 = vmul.f32 %v181_v6, %v161_v5 }
 0x106   :  { %v164_v8 = vsub.f32 2.0, %v163_v7 }
 0x108   :  { %v165_v9 = vmul.f32 %v181_v6, %v164_v8 }
 0x10a   :  { %v166_v10 = vmul.f32 %v179_v62, %v165_v9 }
 0x10c   :  { %167 = vst.msk [vmem:[%s303_s2] sm:$0xff] %vm138_vm8, %v166_v10 }
 0x10d   :  { %172 = vsyncpa [#allocation3], 1 }
 0x10e   :  { %173 = vsyncpa [#allocation5], 1 }

</bundles_post_ra>
